<compile_context>
chip_gen: v6e
topology: v6e:2x2x1
jax: 0.10.0
libtpu: 0.0.40
codegen_flags: <defaults>
</compile_context>

<pallas_src>
import functools

import jax
import jax.numpy as jnp
from jax import lax
from jax.experimental import pallas as pl
from jax.experimental.pallas import tpu as pltpu


def _round_up(x, m):
    return pl.cdiv(x, m) * m


def _vmem_ceiling_bytes():
    """Physical VMEM per core minus ~8 MiB headroom (v5e/v6e: 128 MiB, v7x: 64 MiB)."""
    try:
        cap = int(pltpu.get_tpu_info().vmem_capacity_bytes)
    except Exception:
        cap = 64 << 20                              # conservative (v7x) default
    return max(cap - (8 << 20), 16 << 20)


def _embed_onehot_kernel(wid_ref, eid_ref, wtab_ref, etab_ref, out_ref,
                         *, pack, d_pad):
    """Small-vocab path: exact one-hot (rows, V) x (V, D_pad) MXU matmuls.

    wid_ref / eid_ref : (rows, pack) int32 id blocks (VMEM).
    wtab_ref / etab_ref : (V, D_pad) tables, VMEM-resident, single-buffered.
    out_ref : (rows, pack * D_pad) f32, lane-dense.
    """
    rows = out_ref.shape[0]
    vw = wtab_ref.shape[0]
    ve = etab_ref.shape[0]
    iota_w = lax.broadcasted_iota(jnp.int32, (rows, vw), 1)
    iota_e = lax.broadcasted_iota(jnp.int32, (rows, ve), 1)
    for p in range(pack):                                    # static unroll
        oh_w = (wid_ref[:, p:p + 1] == iota_w).astype(wtab_ref.dtype)
        oh_e = (eid_ref[:, p:p + 1] == iota_e).astype(etab_ref.dtype)
        acc = jnp.dot(oh_w, wtab_ref[...], preferred_element_type=jnp.float32)
        acc = acc + jnp.dot(oh_e, etab_ref[...],
                            preferred_element_type=jnp.float32)
        out_ref[:, p * d_pad:(p + 1) * d_pad] = acc


def _embed_gather_kernel(wid_ref, eid_ref, wtab_ref, etab_ref, out_ref,
                         *, pack, d_pad, n_tokens, group=8):
    """Large-vocab path: exact per-token dynamic row loads from VMEM tables.

    wid_ref / eid_ref : (N_pad,) int32 ids, scalar-prefetched into SMEM.
    out_ref : (rows, pack * D_pad) f32; row g packs tokens [g*pack, (g+1)*pack).
    """
    rows = out_ref.shape[0]
    row0 = pl.program_id(0) * rows

    def group_body(gq, carry):
        base = gq * group

        @pl.when((row0 + base) * pack < n_tokens)   # skip all-padding groups
        def _():
            for dg in range(group):                 # partial unroll (8 rows)
                g = base + dg
                tok0 = (row0 + g) * pack
                for t in range(pack):               # static unroll over packing
                    w = wid_ref[tok0 + t]           # scalar SMEM reads
                    e = eid_ref[tok0 + t]
                    row = (wtab_ref[pl.ds(w, 1), :].astype(jnp.float32)
                           + etab_ref[pl.ds(e, 1), :].astype(jnp.float32))
                    # static lane offset store -- no lane concat
                    out_ref[pl.ds(g, 1), t * d_pad:(t + 1) * d_pad] = row
        return carry

    lax.fori_loop(0, rows // group, group_body, 0)   # rows % group == 0 by construction


def embedding_forward(word_ids, extword_ids, word_table, extword_table, *,
                      tile_n=2048, table_dtype=jnp.float32, force_path=None):
    """Pallas equivalent of Embedding.forward (eval mode): table[wid] + ext[eid]."""
    B, S = word_ids.shape
    Vw, D = word_table.shape
    Ve, D2 = extword_table.shape
    assert D == D2, "word / extword embedding dims must match"

    # Lane-dense layout: pad D so the packed row width is a multiple of 128.
    if D >= 128:
        d_pad = int(_round_up(D, 128))
        pack = 1
    else:
        d_pad = int(pl.next_power_of_2(D))           # divides 128
        pack = 128 // d_pad
    align = 8 * pack

    N = B * S
    # >= 2 grid steps when N allows so the "parallel" axis can use both v7x TCs.
    tile_cap = int(_round_up(pl.cdiv(N, 2), align))
    tile_n = int(max(align, min(int(_round_up(int(tile_n), align)), tile_cap)))
    N_pad = int(_round_up(N, tile_n))
    rows_per_tile = tile_n // pack
    grid = N_pad // tile_n

    # ids: flatten, clamp (no unchecked OOB VMEM reads), pad tail with 0.
    wid = jnp.clip(word_ids.reshape(N).astype(jnp.int32), 0, Vw - 1)
    eid = jnp.clip(extword_ids.reshape(N).astype(jnp.int32), 0, Ve - 1)
    wid = jnp.zeros((N_pad,), jnp.int32).at[:N].set(wid)
    eid = jnp.zeros((N_pad,), jnp.int32).at[:N].set(eid)

    # Tables: optional bf16 storage, zero-pad feature dim to d_pad.
    wtab = word_table.astype(table_dtype)
    etab = extword_table.astype(table_dtype)
    if d_pad != D:
        wtab = jnp.pad(wtab, ((0, 0), (0, d_pad - D)))
        etab = jnp.pad(etab, ((0, 0), (0, d_pad - D)))

    itemsize = jnp.dtype(table_dtype).itemsize
    table_bytes = (Vw + Ve) * d_pad * itemsize           # single-buffered
    out_bytes = 2 * rows_per_tile * pack * d_pad * 4     # double-buffered out
    id_bytes = 2 * 2 * rows_per_tile * 128 * 4           # one-hot id blocks
    need = table_bytes + out_bytes + id_bytes + (4 << 20)
    ceiling = _vmem_ceiling_bytes()

    if need > ceiling:
        # TODO(synk): replace with HBM-resident tables + manual per-row DMA
        # gather (P4) once needed; plain XLA gather fallback for now.
        out = (jnp.take(word_table, jnp.clip(word_ids, 0, Vw - 1), axis=0)
               + jnp.take(extword_table, jnp.clip(extword_ids, 0, Ve - 1), axis=0))
        return out.astype(jnp.float32)

    vmem_limit = int(min(max(need, 32 << 20), ceiling))

    use_onehot = (Vw <= 1024 and Ve <= 1024)
    if force_path == "onehot":
        use_onehot = True
    elif force_path == "gather":
        use_onehot = False

    # Tables: constant index_map -> fetched into VMEM once, single-buffered.
    table_specs = [
        pl.BlockSpec((Vw, d_pad), lambda i, *_: (0, 0),
                     pipeline_mode=pl.Buffered(1)),
        pl.BlockSpec((Ve, d_pad), lambda i, *_: (0, 0),
                     pipeline_mode=pl.Buffered(1)),
    ]
    out_spec = pl.BlockSpec((rows_per_tile, pack * d_pad), lambda i, *_: (i, 0))
    out_shape = jax.ShapeDtypeStruct((N_pad // pack, pack * d_pad), jnp.float32)
    cparams = pltpu.CompilerParams(dimension_semantics=("parallel",),
                                   vmem_limit_bytes=vmem_limit)

    if use_onehot:
        kernel = functools.partial(_embed_onehot_kernel, pack=pack, d_pad=d_pad)
        id_spec = pl.BlockSpec((rows_per_tile, pack), lambda i, *_: (i, 0))
        out_packed = pl.pallas_call(
            kernel,
            out_shape=out_shape,
            grid_spec=pltpu.PrefetchScalarGridSpec(
                num_scalar_prefetch=0,
                grid=(grid,),
                in_specs=[id_spec, id_spec] + table_specs,
                out_specs=out_spec),
            compiler_params=cparams,
        )(wid.reshape(N_pad // pack, pack),
          eid.reshape(N_pad // pack, pack),
          wtab, etab)
    else:
        kernel = functools.partial(_embed_gather_kernel, pack=pack,
                                   d_pad=d_pad, n_tokens=N)
        out_packed = pl.pallas_call(
            kernel,
            out_shape=out_shape,
            grid_spec=pltpu.PrefetchScalarGridSpec(
                num_scalar_prefetch=2,                    # wid, eid -> SMEM
                grid=(grid,),
                in_specs=table_specs,
                out_specs=out_spec),
            compiler_params=cparams,
        )(wid, eid, wtab, etab)

    # Undo packing / feature padding (layout plumbing) and drop padded tokens.
    out = out_packed.reshape(N_pad, d_pad)[:N, :D]
    return out.reshape(B, S, D)


if __name__ == "__main__":
    key = jax.random.PRNGKey(0)
    k_ids_w, k_ids_e, k_ext = jax.random.split(key, 3)

    # Small, module-consistent shapes.
    B, S = 2, 8          # batch, sequence length
    D = 32               # config.word_dims
    Vw = 64              # vocab.word_size
    Ve = 48              # extword (pretrained) vocab size

    # Parameter init mirrors the module's __init__:
    #  - word_embed weights are copied from a zeros array.
    #  - extword_embed weights come from pretrained embeddings (frozen),
    #    synthesized deterministically, row 0 zeroed (padding_idx=0).
    word_table = jnp.zeros((Vw, D), dtype=jnp.float32)
    extword_table = 0.1 * jax.random.normal(k_ext, (Ve, D), dtype=jnp.float32)
    extword_table = extword_table.at[0].set(0.0)

    word_ids = jax.random.randint(k_ids_w, (B, S), 0, Vw, dtype=jnp.int32)
    extword_ids = jax.random.randint(k_ids_e, (B, S), 0, Ve, dtype=jnp.int32)

    # Pure-JAX reference (nn.Embedding lookup + add, eval mode).
    ref = (jnp.take(word_table, word_ids, axis=0)
           + jnp.take(extword_table, extword_ids, axis=0))

    # Exercise both kernel paths (one-hot MXU path and scalar-gather path).
    out_onehot = jax.block_until_ready(
        embedding_forward(word_ids, extword_ids, word_table, extword_table,
                          force_path="onehot"))
    out_gather = jax.block_until_ready(
        embedding_forward(word_ids, extword_ids, word_table, extword_table,
                          force_path="gather"))

    for out in (out_onehot, out_gather):
        assert out.shape == (B, S, D)
        assert out.dtype == jnp.float32
        assert jnp.allclose(out, ref, atol=1e-6), "mismatch vs reference"

    print("KERNEL_OK")
</pallas_src>

<mosaic_0001>
module attributes {stable_mosaic.version = 11 : i64} {
  func.func @_embed_onehot_kernel(%arg0: i32, %arg1: memref<8x4xi32, #tpu.memory_space<vmem>>, %arg2: memref<8x4xi32, #tpu.memory_space<vmem>>, %arg3: memref<64x32xf32, #tpu.memory_space<vmem>>, %arg4: memref<48x32xf32, #tpu.memory_space<vmem>>, %arg5: memref<8x128xf32, #tpu.memory_space<vmem>>) attributes {dimension_semantics = [#tpu.dimension_semantics<parallel>], iteration_bounds = array<i64: 1>, scalar_prefetch = 0 : i64, scratch_operands = 0 : i64, tpu.core_type = #tpu.core_type<tc>, window_params = [{transform_indices = @transform_0, window_bounds = array<i64: 8, 4>}, {transform_indices = @transform_1, window_bounds = array<i64: 8, 4>}, {pipeline_mode = #tpu.pipeline_mode<synchronous>, transform_indices = @transform_2, window_bounds = array<i64: 64, 32>}, {pipeline_mode = #tpu.pipeline_mode<synchronous>, transform_indices = @transform_3, window_bounds = array<i64: 48, 32>}, {transform_indices = @transform_4, window_bounds = array<i64: 8, 128>}]} {
    %0 = tpu.iota {dimensions = array<i32: 1>} : vector<8x64xi32>
    %1 = tpu.iota {dimensions = array<i32: 1>} : vector<8x48xi32>
    %c0 = arith.constant 0 : index
    %c0_0 = arith.constant 0 : index
    %2 = vector.load %arg1[%c0, %c0_0] : memref<8x4xi32, #tpu.memory_space<vmem>>, vector<8x1xi32>
    %3 = vector.broadcast %2 : vector<8x1xi32> to vector<8x64xi32>
    %4 = arith.cmpi eq, %3, %0 : vector<8x64xi32>
    %5 = arith.extui %4 : vector<8x64xi1> to vector<8x64xi32>
    %6 = arith.sitofp %5 : vector<8x64xi32> to vector<8x64xf32>
    %c0_1 = arith.constant 0 : index
    %c0_2 = arith.constant 0 : index
    %7 = vector.load %arg2[%c0_1, %c0_2] : memref<8x4xi32, #tpu.memory_space<vmem>>, vector<8x1xi32>
    %8 = vector.broadcast %7 : vector<8x1xi32> to vector<8x48xi32>
    %9 = arith.cmpi eq, %8, %1 : vector<8x48xi32>
    %10 = arith.extui %9 : vector<8x48xi1> to vector<8x48xi32>
    %11 = arith.sitofp %10 : vector<8x48xi32> to vector<8x48xf32>
    %c0_3 = arith.constant 0 : index
    %c0_4 = arith.constant 0 : index
    %12 = vector.load %arg3[%c0_3, %c0_4] : memref<64x32xf32, #tpu.memory_space<vmem>>, vector<64x32xf32>
    %cst = arith.constant dense<0.000000e+00> : vector<8x32xf32>
    %13 = tpu.matmul %6, %12, %cst {dimension_numbers = #tpu.dot_dimension_numbers<[1], [0], [0], [1], [0, 0, 1, 1], [], []>} : vector<8x64xf32>, vector<64x32xf32>, vector<8x32xf32> -> vector<8x32xf32>
    %c0_5 = arith.constant 0 : index
    %c0_6 = arith.constant 0 : index
    %14 = vector.load %arg4[%c0_5, %c0_6] : memref<48x32xf32, #tpu.memory_space<vmem>>, vector<48x32xf32>
    %cst_7 = arith.constant dense<0.000000e+00> : vector<8x32xf32>
    %15 = tpu.matmul %11, %14, %cst_7 {dimension_numbers = #tpu.dot_dimension_numbers<[1], [0], [0], [1], [0, 0, 1, 1], [], []>} : vector<8x48xf32>, vector<48x32xf32>, vector<8x32xf32> -> vector<8x32xf32>
    %16 = arith.addf %13, %15 : vector<8x32xf32>
    %c0_8 = arith.constant 0 : index
    %c0_9 = arith.constant 0 : index
    %17 = vector.load %arg5[%c0_8, %c0_9] : memref<8x128xf32, #tpu.memory_space<vmem>>, vector<8x32xf32>
    tpu.vector_store %arg5[%c0_8, %c0_9], %16 {strides = array<i32>} : memref<8x128xf32, #tpu.memory_space<vmem>>, vector<8x32xf32>,
    %c0_10 = arith.constant 0 : index
    %c1 = arith.constant 1 : index
    %18 = vector.load %arg1[%c0_10, %c1] : memref<8x4xi32, #tpu.memory_space<vmem>>, vector<8x1xi32>
    %19 = vector.broadcast %18 : vector<8x1xi32> to vector<8x64xi32>
    %20 = arith.cmpi eq, %19, %0 : vector<8x64xi32>
    %21 = arith.extui %20 : vector<8x64xi1> to vector<8x64xi32>
    %22 = arith.sitofp %21 : vector<8x64xi32> to vector<8x64xf32>
    %c0_11 = arith.constant 0 : index
    %c1_12 = arith.constant 1 : index
    %23 = vector.load %arg2[%c0_11, %c1_12] : memref<8x4xi32, #tpu.memory_space<vmem>>, vector<8x1xi32>
    %24 = vector.broadcast %23 : vector<8x1xi32> to vector<8x48xi32>
    %25 = arith.cmpi eq, %24, %1 : vector<8x48xi32>
    %26 = arith.extui %25 : vector<8x48xi1> to vector<8x48xi32>
    %27 = arith.sitofp %26 : vector<8x48xi32> to vector<8x48xf32>
    %c0_13 = arith.constant 0 : index
    %c0_14 = arith.constant 0 : index
    %28 = vector.load %arg3[%c0_13, %c0_14] : memref<64x32xf32, #tpu.memory_space<vmem>>, vector<64x32xf32>
    %cst_15 = arith.constant dense<0.000000e+00> : vector<8x32xf32>
    %29 = tpu.matmul %22, %28, %cst_15 {dimension_numbers = #tpu.dot_dimension_numbers<[1], [0], [0], [1], [0, 0, 1, 1], [], []>} : vector<8x64xf32>, vector<64x32xf32>, vector<8x32xf32> -> vector<8x32xf32>
    %c0_16 = arith.constant 0 : index
    %c0_17 = arith.constant 0 : index
    %30 = vector.load %arg4[%c0_16, %c0_17] : memref<48x32xf32, #tpu.memory_space<vmem>>, vector<48x32xf32>
    %cst_18 = arith.constant dense<0.000000e+00> : vector<8x32xf32>
    %31 = tpu.matmul %27, %30, %cst_18 {dimension_numbers = #tpu.dot_dimension_numbers<[1], [0], [0], [1], [0, 0, 1, 1], [], []>} : vector<8x48xf32>, vector<48x32xf32>, vector<8x32xf32> -> vector<8x32xf32>
    %32 = arith.addf %29, %31 : vector<8x32xf32>
    %c0_19 = arith.constant 0 : index
    %c32 = arith.constant 32 : index
    %33 = vector.load %arg5[%c0_19, %c32] : memref<8x128xf32, #tpu.memory_space<vmem>>, vector<8x32xf32>
    tpu.vector_store %arg5[%c0_19, %c32], %32 {strides = array<i32>} : memref<8x128xf32, #tpu.memory_space<vmem>>, vector<8x32xf32>,
    %c0_20 = arith.constant 0 : index
    %c2 = arith.constant 2 : index
    %34 = vector.load %arg1[%c0_20, %c2] : memref<8x4xi32, #tpu.memory_space<vmem>>, vector<8x1xi32>
    %35 = vector.broadcast %34 : vector<8x1xi32> to vector<8x64xi32>
    %36 = arith.cmpi eq, %35, %0 : vector<8x64xi32>
    %37 = arith.extui %36 : vector<8x64xi1> to vector<8x64xi32>
    %38 = arith.sitofp %37 : vector<8x64xi32> to vector<8x64xf32>
    %c0_21 = arith.constant 0 : index
    %c2_22 = arith.constant 2 : index
    %39 = vector.load %arg2[%c0_21, %c2_22] : memref<8x4xi32, #tpu.memory_space<vmem>>, vector<8x1xi32>
    %40 = vector.broadcast %39 : vector<8x1xi32> to vector<8x48xi32>
    %41 = arith.cmpi eq, %40, %1 : vector<8x48xi32>
    %42 = arith.extui %41 : vector<8x48xi1> to vector<8x48xi32>
    %43 = arith.sitofp %42 : vector<8x48xi32> to vector<8x48xf32>
    %c0_23 = arith.constant 0 : index
    %c0_24 = arith.constant 0 : index
    %44 = vector.load %arg3[%c0_23, %c0_24] : memref<64x32xf32, #tpu.memory_space<vmem>>, vector<64x32xf32>
    %cst_25 = arith.constant dense<0.000000e+00> : vector<8x32xf32>
    %45 = tpu.matmul %38, %44, %cst_25 {dimension_numbers = #tpu.dot_dimension_numbers<[1], [0], [0], [1], [0, 0, 1, 1], [], []>} : vector<8x64xf32>, vector<64x32xf32>, vector<8x32xf32> -> vector<8x32xf32>
    %c0_26 = arith.constant 0 : index
    %c0_27 = arith.constant 0 : index
    %46 = vector.load %arg4[%c0_26, %c0_27] : memref<48x32xf32, #tpu.memory_space<vmem>>, vector<48x32xf32>
    %cst_28 = arith.constant dense<0.000000e+00> : vector<8x32xf32>
    %47 = tpu.matmul %43, %46, %cst_28 {dimension_numbers = #tpu.dot_dimension_numbers<[1], [0], [0], [1], [0, 0, 1, 1], [], []>} : vector<8x48xf32>, vector<48x32xf32>, vector<8x32xf32> -> vector<8x32xf32>
    %48 = arith.addf %45, %47 : vector<8x32xf32>
    %c0_29 = arith.constant 0 : index
    %c64 = arith.constant 64 : index
    %49 = vector.load %arg5[%c0_29, %c64] : memref<8x128xf32, #tpu.memory_space<vmem>>, vector<8x32xf32>
    tpu.vector_store %arg5[%c0_29, %c64], %48 {strides = array<i32>} : memref<8x128xf32, #tpu.memory_space<vmem>>, vector<8x32xf32>,
    %c0_30 = arith.constant 0 : index
    %c3 = arith.constant 3 : index
    %50 = vector.load %arg1[%c0_30, %c3] : memref<8x4xi32, #tpu.memory_space<vmem>>, vector<8x1xi32>
    %51 = vector.broadcast %50 : vector<8x1xi32> to vector<8x64xi32>
    %52 = arith.cmpi eq, %51, %0 : vector<8x64xi32>
    %53 = arith.extui %52 : vector<8x64xi1> to vector<8x64xi32>
    %54 = arith.sitofp %53 : vector<8x64xi32> to vector<8x64xf32>
    %c0_31 = arith.constant 0 : index
    %c3_32 = arith.constant 3 : index
    %55 = vector.load %arg2[%c0_31, %c3_32] : memref<8x4xi32, #tpu.memory_space<vmem>>, vector<8x1xi32>
    %56 = vector.broadcast %55 : vector<8x1xi32> to vector<8x48xi32>
    %57 = arith.cmpi eq, %56, %1 : vector<8x48xi32>
    %58 = arith.extui %57 : vector<8x48xi1> to vector<8x48xi32>
    %59 = arith.sitofp %58 : vector<8x48xi32> to vector<8x48xf32>
    %c0_33 = arith.constant 0 : index
    %c0_34 = arith.constant 0 : index
    %60 = vector.load %arg3[%c0_33, %c0_34] : memref<64x32xf32, #tpu.memory_space<vmem>>, vector<64x32xf32>
    %cst_35 = arith.constant dense<0.000000e+00> : vector<8x32xf32>
    %61 = tpu.matmul %54, %60, %cst_35 {dimension_numbers = #tpu.dot_dimension_numbers<[1], [0], [0], [1], [0, 0, 1, 1], [], []>} : vector<8x64xf32>, vector<64x32xf32>, vector<8x32xf32> -> vector<8x32xf32>
    %c0_36 = arith.constant 0 : index
    %c0_37 = arith.constant 0 : index
    %62 = vector.load %arg4[%c0_36, %c0_37] : memref<48x32xf32, #tpu.memory_space<vmem>>, vector<48x32xf32>
    %cst_38 = arith.constant dense<0.000000e+00> : vector<8x32xf32>
    %63 = tpu.matmul %59, %62, %cst_38 {dimension_numbers = #tpu.dot_dimension_numbers<[1], [0], [0], [1], [0, 0, 1, 1], [], []>} : vector<8x48xf32>, vector<48x32xf32>, vector<8x32xf32> -> vector<8x32xf32>
    %64 = arith.addf %61, %63 : vector<8x32xf32>
    %c0_39 = arith.constant 0 : index
    %c96 = arith.constant 96 : index
    %65 = vector.load %arg5[%c0_39, %c96] : memref<8x128xf32, #tpu.memory_space<vmem>>, vector<8x32xf32>
    tpu.vector_store %arg5[%c0_39, %c96], %64 {strides = array<i32>} : memref<8x128xf32, #tpu.memory_space<vmem>>, vector<8x32xf32>,
    return
  }
  func.func @transform_0(%arg0: i32) -> (i32, i32) {
    %c0_i32 = arith.constant 0 : i32
    %c0_i32_0 = arith.constant 0 : i32
    return %arg0, %c0_i32 : i32, i32
  }
  func.func @transform_1(%arg0: i32) -> (i32, i32) {
    %c0_i32 = arith.constant 0 : i32
    %c0_i32_0 = arith.constant 0 : i32
    return %arg0, %c0_i32 : i32, i32
  }
  func.func @transform_2(%arg0: i32) -> (i32, i32) {
    %c0_i32 = arith.constant 0 : i32
    %c0_i32_0 = arith.constant 0 : i32
    %c0_i32_1 = arith.constant 0 : i32
    return %c0_i32, %c0_i32_0 : i32, i32
  }
  func.func @transform_3(%arg0: i32) -> (i32, i32) {
    %c0_i32 = arith.constant 0 : i32
    %c0_i32_0 = arith.constant 0 : i32
    %c0_i32_1 = arith.constant 0 : i32
    return %c0_i32, %c0_i32_0 : i32, i32
  }
  func.func @transform_4(%arg0: i32) -> (i32, i32) {
    %c0_i32 = arith.constant 0 : i32
    %c0_i32_0 = arith.constant 0 : i32
    return %arg0, %c0_i32 : i32, i32
  }
}

</mosaic_0001>

<bundles_post_ra>
// kernel: tpu_custom_call.1
= control target key start
LH: loop header
LB: loop body
LE: loop exit
PB: predicated region body
PF: predicated region fallthrough
CT: control target
= control target key end

     0   :  { %v1008_v2 = vmov 0   ;;  %v1009_v4 = vmov 0.0   ;;  %s1276_s0 = inlined_call_operand.vmem [shape: s32[8,4], index: 0, kind: input, shape index: {}]   ;;  %s1277_s1 = inlined_call_operand.vmem [shape: s32[8,4], index: 1, kind: input, shape index: {}]   ;;  %s1278_s2 = inlined_call_operand.vmem [shape: f32[64,32], index: 2, kind: input, shape index: {}]   ;;  %s1279_s3 = inlined_call_operand.vmem [shape: f32[48,32], index: 3, kind: input, shape index: {}]   ;;  %s1280_s4 = inlined_call_operand.hbm [shape: f32[8,128], index: 4, kind: output, shape index: {}]  }
   0x1   :  { %v27_v0 = vld [vmem:[%s1277_s1] sm:$0xff]  ;;  %978 = vset.pattern.permute.xlu0 %v1008_v2  ;;  %980 = vset.pattern.permute.xlu1 %v1008_v2  ;;  %v1052_v3 = vld [vmem:[%s1279_s3 + $0x28] sm:$0xff] }
   0x2   :  { %v20_v1 = vld [vmem:[%s1276_s0] sm:$0xff]  ;;  %29 = vperm.xlu0 %978, %v27_v0   ;;  %832 = vmatprep.subr.mxu1 %v1009_v4 }
   0x3   :  { %22 = vperm.xlu1 %980, %v20_v1   ;;  %866 = vmatprep.subr.mxu0 %v1009_v4 }
   0x4   :  { %9 = vsyncpa [#allocation3], 0  ;;  %833 = vmatpush3.msra.mxu1 %v1052_v3  ;;  %867 = vmatpush3.msra.mxu0 %v1052_v3  ;;  %v1062_v5 = vld [vmem:[%s1279_s3 + $0x20] sm:$0xff]  ;;  %v1010_v6 = vmov 1   ;;  %v1011_v7 = vmov 2   ;;  %v1068_v8 = vld [vmem:[%s1279_s3 + $0x18] sm:$0xff]  ;;  %v18_v13 = vlaneseq }
   0x5   :  { %834 = vmatprep.subr.mxu1 %v1009_v4  ;;  %868 = vmatprep.subr.mxu0 %v1009_v4  ;;  %v1012_v9 = vmov 3   ;;  %v1079_v10 = vld [vmem:[%s1279_s3 + $0x10] sm:$0xff]  ;;  %v1085_v11 = vld [vmem:[%s1279_s3 + $0x8] sm:$0xff]  ;;  %vm1013_vm0 = vmmov 0   ;;  %v1095_v12 = vld [vmem:[%s1279_s3] sm:$0xff]  ;;  %vm48_vm1 = vcmask 392192  }
   0x6   :  { %979 = vset.pattern.permute.xlu0 %v1010_v6  ;;  %835 = vmatpush3.msra.mxu1 %v1062_v5  ;;  %v1109_v14 = vand.u32 127, %v18_v13  ;;  %v1115_v16 = vld [vmem:[%s1278_s2 + $0x38] sm:$0xff]  ;;  %v1122_v18 = vld [vmem:[%s1278_s2 + $0x30] sm:$0xff]  ;;  %v1131_v20 = vld [vmem:[%s1278_s2 + $0x28] sm:$0xff]  ;;  %vm122_vm6 = vcmask 523264   ;;  %vm196_vm11 = vcmask 261120  }
   0x7   :  { %981 = vset.pattern.permute.xlu1 %v1011_v7  ;;  %207 = vperm.xlu0 %979, %v27_v0   ;;  %v1140_v22 = vld [vmem:[%s1278_s2 + $0x20] sm:$0xff]  ;;  %v1149_v24 = vld [vmem:[%s1278_s2 + $0x18] sm:$0xff]  ;;  %v1158_v25 = vld [vmem:[%s1278_s2 + $0x10] sm:$0xff]  ;;  %s1015_s18 = smov 96   ;;  %s1016_s19 = smov 64   ;;  %vm376_vm12 = vcmask 523520  }
   0x8   :  { %387 = vperm.xlu1 %981, %v27_v0   ;;  %869 = vmatpush3.msra.mxu0 %v1062_v5  ;;  %v1168_v26 = vld [vmem:[%s1278_s2 + $0x8] sm:$0xff]  ;;  %v1177_v28 = vld [vmem:[%s1278_s2] sm:$0xff]  ;;  %s1014_s2 = smov 32   ;;  %s1017_s20 = smov [#allocation2]   ;;  %vm556_vm13 = vcmask 785920   ;;  %vm736_vm14 = vcmask 1048320  }
   0x9   :  { %836 = vmatprep.subr.mxu1 %v1009_v4  ;;  %870 = vmatprep.subr.mxu0 %v1009_v4  ;;  %s744_s0 = sshll.u32 %s1017_s20, 4  ;;  %s745_s0 = int_to_ptr.vmem [resolvable:$true] %s744_s0 }
   0xa   :  { %837 = vmatpush3.msra.mxu1 %v1068_v8  ;;  %871 = vmatpush3.msra.mxu0 %v1068_v8  ;;  %s986_s1 = scalar_lea.vmem %s745_s0, 128  ;;  %p991_p1 = scmp.lt.s32.totalorder %s745_s0, %s745_s0 }
   0xb   :  { %983 = vset.pattern.permute.xlu0 %v1012_v9  ;;  %838 = vmatprep.subr.mxu1 %v1009_v4  ;;  %p987_p0 = scmp.ne.s32.totalorder %s745_s0, %s986_s1  ;;  %p992_p2 = scmp.lt.s32.totalorder %s986_s1, %s986_s1 }
   0xc   :  { %982 = vset.pattern.permute.xlu1 %v1010_v6  ;;  %567 = vperm.xlu0 %983, %v27_v0  }
   0xd   :  { %200 = vperm.xlu1 %982, %v20_v1   ;;  %872 = vmatprep.subr.mxu0 %v1009_v4  ;;  %p993_p3 = por %p992_p2, %p991_p1 }
   0xe   :  { %839 = vmatpush3.msra.mxu1 %v1079_v10  ;;  %844 = vmatprep.mubr.msk.f32.mxu1 %vm1013_vm0, %v1009_v4 }
   0xf   :  { %840 = vmatprep.subr.mxu1 %v1009_v4  ;;  %873 = vmatpush3.msra.mxu0 %v1079_v10  ;;  %p994_p4 = pnand %p993_p3, %p987_p0 }
  0x10   :  { %841 = vmatpush3.msra.mxu1 %v1085_v11  ;;  %874 = vmatprep.subr.mxu0 %v1009_v4 }
  0x11   :  { %984 = vset.pattern.permute.xlu1 %v1011_v7  ;;  %842 = vmatprep.subr.mxu1 %v1009_v4 }
  0x12   :  { %380 = vperm.xlu1 %984, %v20_v1   ;;  %843 = vmatpush3.msra.mxu1 %v1095_v12 }
  0x13   :  { %847 = vmatprep.subr.mxu1 %v1009_v4  ;;  %875 = vmatpush3.msra.mxu0 %v1085_v11 }
  0x14   :  { %876 = vmatprep.subr.mxu0 %v1009_v4  ;;  %878 = vmatprep.mubr.msk.f32.mxu0 %vm1013_vm0, %v1009_v4 }
  0x15   :  { %877 = vmatpush3.msra.mxu0 %v1095_v12 }
  0x16   :  { %985 = vset.pattern.permute.xlu1 %v1012_v9  ;;  %900 = vmatprep.subr.mxu0 %v1009_v4 }
  0x17   :  { %560 = vperm.xlu1 %985, %v20_v1  }
  0x7d   :  { %v30_v15 = vpop.permute.xlu0 %29 }
  0x7e   :  { %vm31_vm2 = vcmp.eq.s32.totalorder %v30_v15, %v1109_v14  ;;  %v23_v23 = vpop.permute.xlu1 %22 }
  0x7f   :  { %v753_v17 = vsel %vm31_vm2, 1.0, %v1009_v4  ;;  %vm24_vm4 = vcmp.eq.s32.totalorder %v23_v23, %v1109_v14 }
  0x80   :  { %845 = vmatmul.mubr.msk.f32.vlgmr.msra.gmra.mxu1 %vm48_vm1, %v753_v17  ;;  %v752_v29 = vsel %vm24_vm4, 1.0, %v1009_v4 }
  0x81   :  { %848 = vmatpush3.msra.mxu1 %v1115_v16  ;;  %863 = vmatprep.mubr.msk.f32.mxu1 %vm1013_vm0, %v1009_v4 }
  0x82   :  { %849 = vmatprep.subr.mxu1 %v1009_v4  ;;  %v208_v19 = vpop.permute.xlu0 %207 }
  0x83   :  { %vm209_vm3 = vcmp.eq.s32.totalorder %v208_v19, %v1109_v14  ;;  %850 = vmatpush3.msra.mxu1 %v1122_v18  ;;  %v388_v27 = vpop.permute.xlu1 %387 }
  0x84   :  { %v757_v21 = vsel %vm209_vm3, 1.0, %v1009_v4  ;;  %851 = vmatprep.subr.mxu1 %v1009_v4  ;;  %vm389_vm5 = vcmp.eq.s32.totalorder %v388_v27, %v1109_v14 }
  0x85   :  { %852 = vmatpush3.msra.mxu1 %v1131_v20  ;;  %879 = vmatmul.mubr.msk.f32.vlgmr.msra.gmra.mxu0 %vm48_vm1, %v757_v21  ;;  %v761_v30 = vsel %vm389_vm5, 1.0, %v1009_v4 }
  0x86   :  { %853 = vmatprep.subr.mxu1 %v1009_v4  ;;  %901 = vmatpush3.msra.mxu0 %v1052_v3 }
  0x87   :  { %854 = vmatpush3.msra.mxu1 %v1140_v22  ;;  %902 = vmatprep.subr.mxu0 %v1009_v4  ;;  %v568_v31 = vpop.permute.xlu0 %567 }
  0x88   :  { %855 = vmatprep.subr.mxu1 %v1009_v4  ;;  %903 = vmatpush3.msra.mxu0 %v1062_v5  ;;  %vm569_vm7 = vcmp.eq.s32.totalorder %v568_v31, %v1109_v14  ;;  %v201_v32 = vpop.permute.xlu1 %200 }
  0x89   :  { %856 = vmatpush3.msra.mxu1 %v1149_v24  ;;  %904 = vmatprep.subr.mxu0 %v1009_v4  ;;  %v765_v33 = vsel %vm569_vm7, 1.0, %v1009_v4  ;;  %vm202_vm8 = vcmp.eq.s32.totalorder %v201_v32, %v1109_v14 }
  0x8a   :  { %857 = vmatprep.subr.mxu1 %v1009_v4  ;;  %905 = vmatpush3.msra.mxu0 %v1068_v8  ;;  %v756_v34 = vsel %vm202_vm8, 1.0, %v1009_v4 }
  0x8b   :  { %858 = vmatpush3.msra.mxu1 %v1158_v25  ;;  %906 = vmatprep.subr.mxu0 %v1009_v4 }
  0x8c   :  { %859 = vmatprep.subr.mxu1 %v1009_v4  ;;  %907 = vmatpush3.msra.mxu0 %v1079_v10 }
  0x8d   :  { %860 = vmatpush3.msra.mxu1 %v1168_v26  ;;  %908 = vmatprep.subr.mxu0 %v1009_v4  ;;  %v381_v35 = vpop.permute.xlu1 %380 }
  0x8e   :  { %861 = vmatprep.subr.mxu1 %v1009_v4  ;;  %909 = vmatpush3.msra.mxu0 %v1085_v11  ;;  %vm382_vm10 = vcmp.eq.s32.totalorder %v381_v35, %v1109_v14 }
  0x8f   :  { %862 = vmatpush3.msra.mxu1 %v1177_v28  ;;  %910 = vmatprep.subr.mxu0 %v1009_v4  ;;  %v760_v38 = vsel %vm382_vm10, 1.0, %v1009_v4 }
  0x90   :  { %864 = vmatmul.mubr.msk.f32.vlgmr.msra.gmra.mxu1 %vm122_vm6, %v752_v29  ;;  %881 = vmatprep.subr.mxu1 %v1009_v4 }
  0x91   :  { %911 = vmatpush3.msra.mxu0 %v1095_v12  ;;  %882 = vmatpush3.msra.mxu1 %v1115_v16 }
  0x92   :  { %912 = vmatprep.mubr.msk.f32.mxu0 %vm1013_vm0, %v1009_v4  ;;  %934 = vmatprep.subr.mxu0 %v1009_v4  ;;  %v561_v36 = vpop.permute.xlu1 %560 }
  0x93   :  { %883 = vmatprep.subr.mxu1 %v1009_v4  ;;  %913 = vmatmul.mubr.msk.f32.vlgmr.msra.gmra.mxu0 %vm48_vm1, %v761_v30  ;;  %vm562_vm9 = vcmp.eq.s32.totalorder %v561_v36, %v1109_v14 }
  0x94   :  { %935 = vmatpush3.msra.mxu0 %v1052_v3  ;;  %884 = vmatpush3.msra.mxu1 %v1122_v18  ;;  %v764_v37 = vsel %vm562_vm9, 1.0, %v1009_v4 }
  0x95   :  { %936 = vmatprep.subr.mxu0 %v1009_v4  ;;  %885 = vmatprep.subr.mxu1 %v1009_v4 }
  0x96   :  { %937 = vmatpush3.msra.mxu0 %v1062_v5  ;;  %886 = vmatpush3.msra.mxu1 %v1131_v20 }
  0x97   :  { %938 = vmatprep.subr.mxu0 %v1009_v4  ;;  %887 = vmatprep.subr.mxu1 %v1009_v4 }
  0x98   :  { %939 = vmatpush3.msra.mxu0 %v1068_v8  ;;  %888 = vmatpush3.msra.mxu1 %v1140_v22 }
  0x99   :  { %940 = vmatprep.subr.mxu0 %v1009_v4  ;;  %889 = vmatprep.subr.mxu1 %v1009_v4 }
  0x9a   :  { %941 = vmatpush3.msra.mxu0 %v1079_v10  ;;  %890 = vmatpush3.msra.mxu1 %v1149_v24 }
  0x9b   :  { %942 = vmatprep.subr.mxu0 %v1009_v4  ;;  %891 = vmatprep.subr.mxu1 %v1009_v4 }
  0x9c   :  { %943 = vmatpush3.msra.mxu0 %v1085_v11  ;;  %892 = vmatpush3.msra.mxu1 %v1158_v25 }
  0x9d   :  { %944 = vmatprep.subr.mxu0 %v1009_v4  ;;  %893 = vmatprep.subr.mxu1 %v1009_v4 }
  0x9e   :  { %945 = vmatpush3.msra.mxu0 %v1095_v12  ;;  %894 = vmatpush3.msra.mxu1 %v1168_v26 }
  0x9f   :  { %946 = vmatprep.mubr.msk.f32.mxu0 %vm1013_vm0, %v1009_v4  ;;  %949 = vmatprep.subr.mxu0 %v1009_v4 }
  0xa0   :  { %895 = vmatprep.subr.mxu1 %v1009_v4  ;;  %947 = vmatmul.mubr.msk.f32.vlgmr.msra.gmra.mxu0 %vm48_vm1, %v765_v33 }
  0xa1   :  { %950 = vmatpush3.msra.mxu0 %v1115_v16  ;;  %896 = vmatpush3.msra.mxu1 %v1177_v28 }
  0xa2   :  { %897 = vmatprep.mubr.msk.f32.mxu1 %vm1013_vm0, %v1009_v4  ;;  %951 = vmatprep.subr.mxu0 %v1009_v4 }
  0xa3   :  { %898 = vmatmul.mubr.msk.f32.vlgmr.msra.gmra.mxu1 %vm122_vm6, %v756_v34  ;;  %915 = vmatprep.subr.mxu1 %v1009_v4 }
  0xa4   :  { %952 = vmatpush3.msra.mxu0 %v1122_v18  ;;  %916 = vmatpush3.msra.mxu1 %v1115_v16 }
  0xa5   :  { %953 = vmatprep.subr.mxu0 %v1009_v4  ;;  %917 = vmatprep.subr.mxu1 %v1009_v4 }
  0xa6   :  { %954 = vmatpush3.msra.mxu0 %v1131_v20  ;;  %918 = vmatpush3.msra.mxu1 %v1122_v18 }
  0xa7   :  { %955 = vmatprep.subr.mxu0 %v1009_v4  ;;  %919 = vmatprep.subr.mxu1 %v1009_v4 }
  0xa8   :  { %956 = vmatpush3.msra.mxu0 %v1140_v22  ;;  %920 = vmatpush3.msra.mxu1 %v1131_v20 }
  0xa9   :  { %957 = vmatprep.subr.mxu0 %v1009_v4  ;;  %921 = vmatprep.subr.mxu1 %v1009_v4 }
  0xaa   :  { %958 = vmatpush3.msra.mxu0 %v1149_v24  ;;  %922 = vmatpush3.msra.mxu1 %v1140_v22 }
  0xab   :  { %959 = vmatprep.subr.mxu0 %v1009_v4  ;;  %923 = vmatprep.subr.mxu1 %v1009_v4 }
  0xac   :  { %960 = vmatpush3.msra.mxu0 %v1158_v25  ;;  %924 = vmatpush3.msra.mxu1 %v1149_v24 }
  0xad   :  { %961 = vmatprep.subr.mxu0 %v1009_v4  ;;  %925 = vmatprep.subr.mxu1 %v1009_v4 }
  0xae   :  { %962 = vmatpush3.msra.mxu0 %v1168_v26  ;;  %926 = vmatpush3.msra.mxu1 %v1158_v25 }
  0xaf   :  { %963 = vmatprep.subr.mxu0 %v1009_v4  ;;  %927 = vmatprep.subr.mxu1 %v1009_v4 }
  0xb0   :  { %964 = vmatpush3.msra.mxu0 %v1177_v28  ;;  %965 = vmatprep.mubr.msk.f32.mxu0 %vm1013_vm0, %v1009_v4 }
  0xb1   :  { %928 = vmatpush3.msra.mxu1 %v1168_v26  ;;  %966 = vmatmul.mubr.msk.f32.vlgmr.msra.gmra.mxu0 %vm122_vm6, %v764_v37 }
  0xb2   :  { %929 = vmatprep.subr.mxu1 %v1009_v4  ;;  %931 = vmatprep.mubr.msk.f32.mxu1 %vm1013_vm0, %v1009_v4 }
  0xb3   :  { %930 = vmatpush3.msra.mxu1 %v1177_v28 }
  0xb4   :  { %932 = vmatmul.mubr.msk.f32.vlgmr.msra.gmra.mxu1 %vm122_vm6, %v760_v38 }
 0x140   :  { %v118_v39 = vpop.f32.mrf.mxu1 }
 0x142   :  { %v846_v40 = vpop.f32.mrf.mxu1 }
 0x145   :  { %v295_v41 = vpop.f32.mrf.mxu0 }
 0x147   :  { %v880_v42 = vpop.f32.mrf.mxu0 }
 0x150   :  { %v192_v43 = vpop.f32.mrf.mxu1 }
 0x151   :  { %v193_v44 = vadd.f32 %v192_v43, %v118_v39 }
 0x152   :  { %v865_v45 = vpop.f32.mrf.mxu1 }
 0x153   :  { %197 = vst.msk [vmem:[#allocation2] sm:$0xff] %vm196_vm11, %v193_v44  ;;  %v475_v46 = vpop.f32.mrf.mxu0 }
 0x155   :  { %v914_v47 = vpop.f32.mrf.mxu0 }
 0x160   :  { %v655_v48 = vpop.f32.mrf.mxu0 }
 0x162   :  { %v948_v49 = vpop.f32.mrf.mxu0 }
 0x163   :  { %v368_v50 = vpop.f32.mrf.mxu1 }
 0x164   :  { %v369_v51 = vadd.f32 %v368_v50, %v295_v41 }
 0x165   :  { %v899_v52 = vpop.f32.mrf.mxu1 }
 0x166   :  { %373 = vrot.lane.b32.xlu0 %v369_v51, %s1014_s2 }
 0x171   :  { %v728_v53 = vpop.f32.mrf.mxu0 }
 0x172   :  { %v729_v54 = vadd.f32 %v728_v53, %v655_v48 }
 0x173   :  { %v967_v55 = vpop.f32.mrf.mxu0 }
 0x174   :  { %733 = vrot.lane.b32.xlu0 %v729_v54, %s1015_s18  ;;  %v548_v56 = vpop.f32.mrf.mxu1 }
 0x175   :  { %v549_v57 = vadd.f32 %v548_v56, %v475_v46 }
 0x176   :  { %v933_v58 = vpop.f32.mrf.mxu1 }
 0x177   :  { %553 = vrot.lane.b32.xlu1 %v549_v57, %s1016_s19 }
 0x1d8   :  { %v374_v59 = vpop.permute.xlu0 %373 }
 0x1d9   :  { %377 = vst.msk [vmem:[#allocation2] sm:$0xff] %vm376_vm12, %v374_v59 }
 0x1e6   :  { %v734_v61 = vpop.permute.xlu0 %733 }
 0x1e9   :  { %v554_v60 = vpop.permute.xlu1 %553 }
 0x1ea   :  { %557 = vst.msk [vmem:[#allocation2] sm:$0xff] %vm556_vm13, %v554_v60 }
 0x1eb   :  { %737 = vst.msk [vmem:[#allocation2] sm:$0xff] %vm736_vm14, %v734_v61 }
 0x1ec   :  { %997 = shalt.err (!%p994_p4)
}
 0x1ed   :  { %747 = dma.vmem_to_hbm [thread:$0]  %s745_s0, 128, %s1280_s4, [#allocation3]  }
 0x1ee   :  { %1006 = dma.done.wait [#allocation3], 128  }
 0x1ef   :  { %1007 = vsyncadd [#allocation3], 4294967168 }
 0x1f0   :  { %751 = vsyncpa [#allocation3], 1 }

</bundles_post_ra>
